<compile_context>
chip_gen: v5e
topology: v5e:2x2
jax: 0.10.0
libtpu: 0.0.40
codegen_flags: <defaults>
</compile_context>

<pallas_src>
import jax
import jax.numpy as jnp
from jax.experimental import pallas as pl
from jax.experimental.pallas import tpu as pltpu


def _se_kernel(x_ref, wdt_ref, bd_ref, wut_ref, bu_ref, o_ref):
    # x_ref / o_ref : (Nb, C, HW)
    # wdt_ref: (C, I)   down 1x1-conv weight, transposed
    # bd_ref : (1, I)   down bias
    # wut_ref: (I, C)   up 1x1-conv weight, transposed
    # bu_ref : (1, C)   up bias
    x = x_ref[...]
    xf = x.astype(jnp.float32)

    # AdaptiveAvgPool2d(1): mean over flattened spatial axis -> (Nb, C) f32.
    pooled = jnp.mean(xf, axis=2)

    # down 1x1 conv + ReLU : (Nb, C) @ (C, I) + (1, I)
    h = jnp.dot(pooled, wdt_ref[...],
                preferred_element_type=jnp.float32) + bd_ref[...]
    h = jnp.maximum(h, 0.0)                                  # (Nb, I)

    # up 1x1 conv + sigmoid : (Nb, I) @ (I, C) + (1, C)
    s = jnp.dot(h, wut_ref[...],
                preferred_element_type=jnp.float32) + bu_ref[...]
    s = jax.nn.sigmoid(s)                                    # (Nb, C) f32

    # Channel-wise rescale of the input (VPU broadcast multiply).
    o_ref[...] = (xf * s[:, :, None]).astype(o_ref.dtype)


def _pick_batch_block(n, per_elem_bytes, target_bytes=2 << 20, cap_bytes=10 << 20):
    """How many batch elements each grid step processes (must divide N).

    Aim for an x block >= ~2 MiB (amortize per-step overhead, reach HBM
    roofline) while keeping the double-buffered in+out footprint (4x block)
    under ~40 MiB so it also fits v7x's 64 MiB VMEM.  Prefer leaving >= 2 grid
    steps (megacore) when that doesn't shrink the block below ~1 MiB.
    """
    divisors = [d for d in range(1, n + 1) if n % d == 0]
    fitting = [d for d in divisors if d * per_elem_bytes <= cap_bytes]
    if not fitting:
        # TODO(synk): a single batch element already exceeds the comfortable
        # VMEM cap; an in-kernel spatial tiling with a running-sum pool
        # accumulator would be needed for such shapes (still one HBM pass).
        return 1
    for d in fitting:
        if d * per_elem_bytes >= target_bytes:
            return d
    best = fitting[-1]
    if best == n and n > 1:
        proper = [d for d in fitting if d < n]
        if proper and proper[-1] * per_elem_bytes >= (1 << 20):
            best = proper[-1]
    return best


def se_block(x, w_down, b_down, w_up, b_up):
    """x: (N, C, H, W). Conv weights as in nn.Conv2d 1x1: (I,C,1,1)/(C,I,1,1)."""
    N, C, H, W = x.shape
    I = w_down.shape[0]
    HW = H * W
    dtype = x.dtype
    itemsize = jnp.dtype(dtype).itemsize

    # Contiguous merge of H,W -> free reshape, no transpose / extra HBM pass.
    x_flat = x.reshape(N, C, HW)

    # 1x1 conv weights, pre-transposed so the kernel does plain (B,C)@(C,I).
    wd_t = w_down.reshape(I, C).T                            # (C, I)
    wu_t = w_up.reshape(C, I).T                              # (I, C)
    bd = b_down.reshape(1, I)
    bu = b_up.reshape(1, C)

    per_elem_bytes = C * HW * itemsize
    nb = _pick_batch_block(N, per_elem_bytes)
    grid = (N // nb,)

    block_bytes = nb * per_elem_bytes
    param_bytes = (2 * C * I + C + I) * 4
    # in + out blocks, each double-buffered, plus params + slack.
    vmem_needed = 4 * block_bytes + 2 * param_bytes + (1 << 20)
    vmem_limit = int(min(max(vmem_needed, 32 << 20), 120 << 20))

    cost = pl.CostEstimate(
        flops=2 * N * C * HW + 4 * N * C * I,
        transcendentals=N * C,
        bytes_accessed=2 * N * C * HW * itemsize + param_bytes,
    )

    out = pl.pallas_call(
        _se_kernel,
        out_shape=jax.ShapeDtypeStruct((N, C, HW), dtype),
        grid_spec=pltpu.PrefetchScalarGridSpec(
            num_scalar_prefetch=0,
            grid=grid,
            in_specs=[
                pl.BlockSpec((nb, C, HW), lambda n: (n, 0, 0)),
                pl.BlockSpec((C, I), lambda n: (0, 0)),
                pl.BlockSpec((1, I), lambda n: (0, 0)),
                pl.BlockSpec((I, C), lambda n: (0, 0)),
                pl.BlockSpec((1, C), lambda n: (0, 0)),
            ],
            out_specs=pl.BlockSpec((nb, C, HW), lambda n: (n, 0, 0)),
        ),
        compiler_params=pltpu.CompilerParams(
            dimension_semantics=("parallel",),
            vmem_limit_bytes=vmem_limit),
        input_output_aliases={0: 0},
        cost_estimate=cost,
    )(x_flat, wd_t, bd, wu_t, bu)

    return out.reshape(N, C, H, W)


def se_block_reference(x, w_down, b_down, w_up, b_up):
    """Pure-JAX reference mirroring the PyTorch forward."""
    N, C, H, W = x.shape
    I = w_down.shape[0]
    pooled = jnp.mean(x, axis=(2, 3))                        # (N, C)
    h = jnp.maximum(pooled @ w_down.reshape(I, C).T + b_down, 0.0)
    s = jax.nn.sigmoid(h @ w_up.reshape(C, I).T + b_up)      # (N, C)
    return x * s[:, :, None, None]


def _make_case(key, N, C, H, W, internal):
    k_x, k_wd, k_bd, k_wu, k_bu = jax.random.split(key, 5)
    x = jax.random.normal(k_x, (N, C, H, W), dtype=jnp.float32)
    w_down = jax.random.normal(k_wd, (internal, C, 1, 1), dtype=jnp.float32) * 0.1
    b_down = jax.random.normal(k_bd, (internal,), dtype=jnp.float32) * 0.1
    w_up = jax.random.normal(k_wu, (C, internal, 1, 1), dtype=jnp.float32) * 0.1
    b_up = jax.random.normal(k_bu, (C,), dtype=jnp.float32) * 0.1
    return x, w_down, b_down, w_up, b_up


if __name__ == "__main__":
    key = jax.random.PRNGKey(0)
    k1, k2 = jax.random.split(key)

    # Case 1: small channels (demo shape), HW = 256 on lanes.
    args1 = _make_case(k1, 2, 4, 16, 16, 8)
    out1 = se_block(*args1)
    jax.block_until_ready(out1)
    ref1 = se_block_reference(*args1)
    assert out1.shape == args1[0].shape
    assert jnp.allclose(out1, ref1, atol=1e-4, rtol=1e-4)

    # Case 2: typical SE-ish channel count, HW = 64 (not a lane multiple).
    args2 = _make_case(k2, 2, 128, 8, 8, 8)
    out2 = se_block(*args2)
    jax.block_until_ready(out2)
    ref2 = se_block_reference(*args2)
    assert out2.shape == args2[0].shape
    assert jnp.allclose(out2, ref2, atol=1e-4, rtol=1e-4)

    print("KERNEL_OK")
</pallas_src>

<mosaic_0001>
module attributes {stable_mosaic.version = 11 : i64} {
  func.func @_se_kernel(%arg0: i32, %arg1: memref<2x4x256xf32, #tpu.memory_space<vmem>>, %arg2: memref<4x8xf32, #tpu.memory_space<vmem>>, %arg3: memref<1x8xf32, #tpu.memory_space<vmem>>, %arg4: memref<8x4xf32, #tpu.memory_space<vmem>>, %arg5: memref<1x4xf32, #tpu.memory_space<vmem>>, %arg6: memref<2x4x256xf32, #tpu.memory_space<vmem>>) attributes {dimension_semantics = [#tpu.dimension_semantics<parallel>], iteration_bounds = array<i64: 1>, scalar_prefetch = 0 : i64, scratch_operands = 0 : i64, tpu.core_type = #tpu.core_type<tc>, window_params = [{transform_indices = @transform_0, window_bounds = array<i64: 2, 4, 256>}, {pipeline_mode = #tpu.pipeline_mode<synchronous>, transform_indices = @transform_1, window_bounds = array<i64: 4, 8>}, {pipeline_mode = #tpu.pipeline_mode<synchronous>, transform_indices = @transform_2, window_bounds = array<i64: 1, 8>}, {pipeline_mode = #tpu.pipeline_mode<synchronous>, transform_indices = @transform_3, window_bounds = array<i64: 8, 4>}, {pipeline_mode = #tpu.pipeline_mode<synchronous>, transform_indices = @transform_4, window_bounds = array<i64: 1, 4>}, {transform_indices = @transform_5, window_bounds = array<i64: 2, 4, 256>}]} {
    %c0 = arith.constant 0 : index
    %c0_0 = arith.constant 0 : index
    %c0_1 = arith.constant 0 : index
    %0 = vector.load %arg1[%c0, %c0_0, %c0_1] : memref<2x4x256xf32, #tpu.memory_space<vmem>>, vector<2x4x256xf32>
    %cst = arith.constant dense<0.000000e+00> : vector<2x4xf32>
    %1 = vector.multi_reduction <add>, %0, %cst [2] : vector<2x4x256xf32> to vector<2x4xf32>
    %cst_2 = arith.constant 2.560000e+02 : f32
    %2 = vector.broadcast %cst_2 : f32 to vector<2x4xf32>
    %3 = arith.divf %1, %2 : vector<2x4xf32>
    %c0_3 = arith.constant 0 : index
    %c0_4 = arith.constant 0 : index
    %4 = vector.load %arg2[%c0_3, %c0_4] : memref<4x8xf32, #tpu.memory_space<vmem>>, vector<4x8xf32>
    %cst_5 = arith.constant dense<0.000000e+00> : vector<2x8xf32>
    %5 = tpu.matmul %3, %4, %cst_5 {dimension_numbers = #tpu.dot_dimension_numbers<[1], [0], [0], [1], [0, 0, 1, 1], [], []>} : vector<2x4xf32>, vector<4x8xf32>, vector<2x8xf32> -> vector<2x8xf32>
    %c0_6 = arith.constant 0 : index
    %c0_7 = arith.constant 0 : index
    %6 = vector.load %arg3[%c0_6, %c0_7] : memref<1x8xf32, #tpu.memory_space<vmem>>, vector<1x8xf32>
    %7 = vector.broadcast %6 : vector<1x8xf32> to vector<2x8xf32>
    %8 = arith.addf %5, %7 : vector<2x8xf32>
    %cst_8 = arith.constant 0.000000e+00 : f32
    %9 = vector.broadcast %cst_8 : f32 to vector<2x8xf32>
    %10 = arith.maximumf %8, %9 : vector<2x8xf32>
    %c0_9 = arith.constant 0 : index
    %c0_10 = arith.constant 0 : index
    %11 = vector.load %arg4[%c0_9, %c0_10] : memref<8x4xf32, #tpu.memory_space<vmem>>, vector<8x4xf32>
    %cst_11 = arith.constant dense<0.000000e+00> : vector<2x4xf32>
    %12 = tpu.matmul %10, %11, %cst_11 {dimension_numbers = #tpu.dot_dimension_numbers<[1], [0], [0], [1], [0, 0, 1, 1], [], []>} : vector<2x8xf32>, vector<8x4xf32>, vector<2x4xf32> -> vector<2x4xf32>
    %c0_12 = arith.constant 0 : index
    %c0_13 = arith.constant 0 : index
    %13 = vector.load %arg5[%c0_12, %c0_13] : memref<1x4xf32, #tpu.memory_space<vmem>>, vector<1x4xf32>
    %14 = vector.broadcast %13 : vector<1x4xf32> to vector<2x4xf32>
    %15 = arith.addf %12, %14 : vector<2x4xf32>
    %16 = arith.negf %15 : vector<2x4xf32>
    %17 = math.exp %16 : vector<2x4xf32>
    %cst_14 = arith.constant 1.000000e+00 : f32
    %18 = vector.broadcast %cst_14 : f32 to vector<2x4xf32>
    %19 = arith.addf %18, %17 : vector<2x4xf32>
    %20 = arith.divf %18, %19 : vector<2x4xf32>
    %21 = vector.shape_cast %20 : vector<2x4xf32> to vector<2x4x1xf32>
    %22 = vector.broadcast %21 : vector<2x4x1xf32> to vector<2x4x256xf32>
    %23 = arith.mulf %0, %22 : vector<2x4x256xf32>
    %c0_15 = arith.constant 0 : index
    %c0_16 = arith.constant 0 : index
    %c0_17 = arith.constant 0 : index
    %24 = vector.load %arg6[%c0_15, %c0_16, %c0_17] : memref<2x4x256xf32, #tpu.memory_space<vmem>>, vector<2x4x256xf32>
    tpu.vector_store %arg6[%c0_15, %c0_16, %c0_17], %23 {strides = array<i32>} : memref<2x4x256xf32, #tpu.memory_space<vmem>>, vector<2x4x256xf32>,
    return
  }
  func.func @transform_0(%arg0: i32) -> (i32, i32, i32) {
    %c0_i32 = arith.constant 0 : i32
    %c0_i32_0 = arith.constant 0 : i32
    %c0_i32_1 = arith.constant 0 : i32
    return %arg0, %c0_i32, %c0_i32_0 : i32, i32, i32
  }
  func.func @transform_1(%arg0: i32) -> (i32, i32) {
    %c0_i32 = arith.constant 0 : i32
    %c0_i32_0 = arith.constant 0 : i32
    %c0_i32_1 = arith.constant 0 : i32
    return %c0_i32, %c0_i32_0 : i32, i32
  }
  func.func @transform_2(%arg0: i32) -> (i32, i32) {
    %c0_i32 = arith.constant 0 : i32
    %c0_i32_0 = arith.constant 0 : i32
    %c0_i32_1 = arith.constant 0 : i32
    return %c0_i32, %c0_i32_0 : i32, i32
  }
  func.func @transform_3(%arg0: i32) -> (i32, i32) {
    %c0_i32 = arith.constant 0 : i32
    %c0_i32_0 = arith.constant 0 : i32
    %c0_i32_1 = arith.constant 0 : i32
    return %c0_i32, %c0_i32_0 : i32, i32
  }
  func.func @transform_4(%arg0: i32) -> (i32, i32) {
    %c0_i32 = arith.constant 0 : i32
    %c0_i32_0 = arith.constant 0 : i32
    %c0_i32_1 = arith.constant 0 : i32
    return %c0_i32, %c0_i32_0 : i32, i32
  }
  func.func @transform_5(%arg0: i32) -> (i32, i32, i32) {
    %c0_i32 = arith.constant 0 : i32
    %c0_i32_0 = arith.constant 0 : i32
    %c0_i32_1 = arith.constant 0 : i32
    return %arg0, %c0_i32, %c0_i32_0 : i32, i32, i32
  }
}

</mosaic_0001>

<bundles_post_ra>
// kernel: tpu_custom_call.1
= control target key start
LH: loop header
LB: loop body
LE: loop exit
PB: predicated region body
PF: predicated region fallthrough
CT: control target
= control target key end

     0   :  { %10 = vsyncpa [#allocation3], 0  ;;  %s354_s0 = inlined_call_operand.hbm [shape: f32[2,4,256], index: 0, kind: input, shape index: {}, may-alias: {0,5}]   ;;  %s355_s1 = inlined_call_operand.vmem [shape: f32[4,8], index: 1, kind: input, shape index: {}]   ;;  %s356_s2 = inlined_call_operand.vmem [shape: f32[1,8], index: 2, kind: input, shape index: {}]   ;;  %s357_s3 = inlined_call_operand.vmem [shape: f32[8,4], index: 3, kind: input, shape index: {}]   ;;  %s358_s4 = inlined_call_operand.vmem [shape: f32[1,4], index: 4, kind: input, shape index: {}]   ;;  %s359_s5 = inlined_call_operand.hbm [shape: f32[2,4,256], index: 5, kind: output, shape index: {}, may-alias: {0,5}]  }
   0x1   :  { %11 = vsyncpa [#allocation4], 0  ;;  %s16_s20 = sshll.u32 %s354_s0, 4  ;;  %s281_s21 = smov [#allocation2]   ;;  %s17_s20 = int_to_ptr.hbm [resolvable:$true] %s16_s20 }
   0x2   :  { %s18_s22 = sshll.u32 %s281_s21, 4  ;;  %s282_s23 = smov 128   ;;  %s19_s22 = int_to_ptr.vmem [resolvable:$true] %s18_s22 }
   0x3   :  { %s283_s24 = smov 8  }
   0x4   :  { %24 = dma.hbm_to_vmem [thread:$0]  %s17_s20, 256, %s19_s22, [#allocation3], %s282_s23, %s282_s23, %s283_s24  }
   0x5   :  { %277 = dma.done.wait [#allocation3], 256  }
   0x6   :  { %278 = vsyncadd [#allocation3], 4294967040  ;;  %v323_v0 = vld [vmem:[#allocation2] sm:$0xff]  ;;  %v325_v1 = vld [vmem:[#allocation2 + $0x8] sm:$0xff]  ;;  %vm52_vm0 = vcmask 1043456   ;;  %v284_v12 = vmov 256.0   ;;  %v79_v20 = vlaneseq }
   0x7   :  { %41 = vst [vmem:[#allocation1] ss:$2 sm:$0xff] %v323_v0  ;;  %223 = vrcp.f32 %v284_v12  ;;  %v72_v13 = vld [vmem:[%s355_s1] sm:$0xf]  ;;  %vm83_vm2 = vcmask 1041409   ;;  %vm85_vm3 = vcmask 31744  }
   0x8   :  { %45 = vst [vmem:[#allocation1 + $0x10] ss:$2 sm:$0xff] %v325_v1  ;;  %209 = vmatpush.msk.msra.mxu0 %vm52_vm0, %v72_v13  ;;  %v80_v22 = vand.u32 127, %v79_v20  ;;  %v112_v29 = vld [vmem:[%s357_s3] sm:$0xff]  ;;  %vm117_vm4 = vcmask 64512   ;;  %v162_v34 = vshrl.u32 %v79_v20, 7 }
   0x9   :  { %136 = vmatpush.msra.mxu1 %v112_v29  ;;  %v221_v30 = vld [vmem:[%s356_s2] ss:$0 sm:$0xff]  ;;  %v285_v53 = vmov 839922192   ;;  %s286_s2 = smov [#allocation5]   ;;  %s196_s7 = sshll.u32 %s359_s5, 4  ;;  %s197_s7 = int_to_ptr.hbm [resolvable:$true] %s196_s7 }
   0xa   :  { %219 = vset.pattern.permute.xlu1 %v162_v34  ;;  %220 = vset.pattern.permute.xlu0 %v162_v34  ;;  %v222_v35 = vld [vmem:[%s358_s4] ss:$0 sm:$0xff]  ;;  %v177_v54 = vunpack.c.l.s4 %v285_v53  ;;  %s194_s3 = sshll.u32 %s286_s2, 4  ;;  %s195_s3 = int_to_ptr.vmem [resolvable:$true] %s194_s3 }
   0xc   :  { %v178_v55 = vunpack.c.0.s8 %v177_v54 }
   0xd   :  { %v224_v14 = vpop.eup %223 }
   0xe   :  { %v42_v2 = vld.sshfl [vmem:[#allocation1] sm:$0xff pattern:$0x75316420]  ;;  %v43_v3 = vld.sshfl [vmem:[#allocation1 + $0x8] sm:$0xff pattern:$0x75316420]  ;;  %vm68_vm1 = vweird.f32 %v224_v14 }
   0xf   :  { %v53_v4 = vsel %vm52_vm0, %v42_v2, 0.0  ;;  %v54_v5 = vsel %vm52_vm0, %v43_v3, 0.0  ;;  %v46_v7 = vld.sshfl [vmem:[#allocation1 + $0x10] sm:$0xff pattern:$0x75316420]  ;;  %v64_v15 = vmul.f32 256.0, %v224_v14 }
  0x10   :  { %v55_v6 = vadd.f32 %v54_v5, %v53_v4  ;;  %v47_v8 = vld.sshfl [vmem:[#allocation1 + $0x18] sm:$0xff pattern:$0x75316420]  ;;  %v58_v9 = vsel %vm52_vm0, %v46_v7, 0.0 }
  0x11   :  { %v59_v10 = vsel %vm52_vm0, %v47_v8, 0.0  ;;  %v65_v16 = vsub.f32 1.0, %v64_v15 }
  0x12   :  { %56 = vadd.xlane.f32.xlu0 %v55_v6  ;;  %v60_v11 = vadd.f32 %v59_v10, %v58_v9 }
  0x13   :  { %v66_v17 = vmul.f32 %v224_v14, %v65_v16 }
  0x15   :  { %v67_v18 = vadd.f32 %v224_v14, %v66_v17 }
  0x17   :  { %v69_v21 = vsel %vm68_vm1, %v224_v14, %v67_v18 }
  0x1a   :  { %61 = vadd.xlane.f32.xlu0 %v60_v11 }
  0x85   :  { %v57_v19 = vpop.xlane.xlu0 %56 }
  0x86   :  { %v70_v23 = vmul.f32 %v69_v21, %v57_v19 }
  0x88   :  { %v81_v26 = vperm.slane %v70_v23, %v80_v22 }
  0x8d   :  { %v62_v24 = vpop.xlane.xlu0 %61 }
  0x8e   :  { %v71_v25 = vmul.f32 %v69_v21, %v62_v24 }
  0x90   :  { %v82_v27 = vperm.slane %v71_v25, %v80_v22 }
  0x92   :  { %v84_v28 = vsel %vm83_vm2, %v82_v27, %v81_v26 }
  0x93   :  { %210 = vmatmul.msk.f32.vlgmr.msra.gmra.mxu0 %vm85_vm3, %v84_v28 }
 0x110   :  { %v108_v31 = vpop.f32.mrf.mxu0 }
 0x111   :  { %v109_v32 = vadd.f32 %v221_v30, %v108_v31 }
 0x113   :  { %v111_v33 = vmax.f32 %v109_v32, 0.0 }
 0x115   :  { %211 = vmatmul.msk.f32.vlgmr.msra.gmra.mxu1 %vm117_vm4, %v111_v33 }
 0x192   :  { %v138_v36 = vpop.f32.mrf.mxu1 }
 0x193   :  { %v139_v37 = vadd.f32 %v222_v35, %v138_v36 }
 0x195   :  { %v212_v38 = vmul.f32 -1.442695, %v139_v37 }
 0x197   :  { %225 = vpow2.f32 %v212_v38 }
 0x19d   :  { %v226_v39 = vpop.eup %225 }
 0x19e   :  { %v144_v40 = vadd.f32 1.0, %v226_v39 }
 0x1a0   :  { %227 = vrcp.f32 %v144_v40  ;;  %v156_v44 = vand.u32 2147483648, %v144_v40  ;;  %v154_v46 = vand.u32 2147483647, %v144_v40  ;;  %vm150_vm6 = vweird.f32 %v144_v40 }
 0x1a2   :  { %v157_v48 = vor.u32 1.1754944e-38, %v156_v44  ;;  %vm155_vm8 = vcmp.eq.f32.partialorder %v154_v46, 8.507059e+37 }
 0x1a6   :  { %v228_v41 = vpop.eup %227 }
 0x1a7   :  { %v146_v42 = vmul.f32 %v228_v41, %v144_v40  ;;  %vm151_vm5 = vweird.f32 %v228_v41 }
 0x1a8   :  { %vm152_vm7 = vmor %vm150_vm6, %vm151_vm5 }
 0x1a9   :  { %v147_v43 = vsub.f32 1.0, %v146_v42 }
 0x1ab   :  { %v148_v45 = vmul.f32 %v228_v41, %v147_v43 }
 0x1ad   :  { %v149_v47 = vadd.f32 %v228_v41, %v148_v45 }
 0x1af   :  { %v153_v49 = vsel %vm152_vm7, %v228_v41, %v149_v47 }
 0x1b0   :  { %v158_v50 = vsel %vm155_vm8, %v157_v48, %v153_v49 }
 0x1b1   :  { %v160_v51 = vperm.slane %v158_v50, 0  ;;  %v167_v52 = vperm.slane %v158_v50, 1 }
 0x1b3   :  { %165 = vperm.xlu1 %219, %v160_v51  }
 0x1bb   :  { %172 = vperm.xlu1 %219, %v167_v52  }
 0x225   :  { %v166_v56 = vpop.permute.xlu1 %165 }
 0x226   :  { %v179_v57 = vperm.slane %v166_v56, %v178_v55 }
 0x228   :  { %v186_v58 = vmul.f32 %v179_v57, %v323_v0 }
 0x22a   :  { %188 = vst [vmem:[#allocation5] sm:$0xff] %v186_v58 }
 0x22d   :  { %v173_v59 = vpop.permute.xlu1 %172 }
 0x22e   :  { %v183_v60 = vperm.slane %v173_v59, %v178_v55 }
 0x230   :  { %v187_v61 = vmul.f32 %v183_v60, %v325_v1 }
 0x232   :  { %189 = vst [vmem:[#allocation5 + $0x8] sm:$0xff] %v187_v61 }
 0x233   :  { %202 = dma.vmem_to_hbm [thread:$0]  %s195_s3, 256, %s197_s7, [#allocation4], %s282_s23, %s282_s23, %s283_s24  }
 0x234   :  { %279 = dma.done.wait [#allocation4], 256  }
 0x235   :  { %280 = vsyncadd [#allocation4], 4294967040 }
 0x236   :  { %207 = vsyncpa [#allocation3], 1 }
 0x237   :  { %208 = vsyncpa [#allocation4], 1 }

</bundles_post_ra>
